<compile_context>
chip_gen: v7x
topology: tpu7x:2x2x1
jax: 0.10.0
libtpu: 0.0.40
codegen_flags: <defaults>
</compile_context>

<pallas_src>
import functools

import jax
import jax.numpy as jnp
from jax.experimental import pallas as pl
from jax.experimental.pallas import tpu as pltpu

_MIB = 1024 * 1024


def _cdiv(a, b):
    return -(-a // b)


def _round_up(a, b):
    return _cdiv(a, b) * b


# ----------------------------- kernel bodies -----------------------------


def _cola_kernel_bias(x_ref, w_ref, bias_ref, o_ref, *, compute_dtype):
    # x_ref    : (tm, rank)   activation row tile (streams over M)
    # w_ref    : (rank, tn)   projection tile (resident across the M sweep)
    # bias_ref : (1, tn)      bias tile       (resident across the M sweep)
    # o_ref    : (tm, tn)     output tile
    x = x_ref[...].astype(compute_dtype)
    w = w_ref[...].astype(compute_dtype)
    acc = jnp.dot(x, w, preferred_element_type=jnp.float32)
    acc = acc + bias_ref[...].astype(jnp.float32)
    o_ref[...] = acc.astype(o_ref.dtype)


def _cola_kernel_nobias(x_ref, w_ref, o_ref, *, compute_dtype):
    x = x_ref[...].astype(compute_dtype)
    w = w_ref[...].astype(compute_dtype)
    acc = jnp.dot(x, w, preferred_element_type=jnp.float32)
    o_ref[...] = acc.astype(o_ref.dtype)


# ----------------------------- tile sizing -------------------------------


def _vmem_budget():
    """(tile-byte budget, scoped vmem limit) safe on every TPU generation."""
    try:
        phys = int(pltpu.get_tpu_info().vmem_capacity_bytes)
    except Exception:
        phys = 0
    if phys < 16 * _MIB:
        phys = 64 * _MIB  # conservative floor: v7x physical VMEM per core
    budget = min(phys // 2, 56 * _MIB)         # pipeline buffers + f32 acc
    limit = min(int(phys * 0.75), 100 * _MIB)  # raise the small scoped default
    return budget, limit


def _usage(tm, tn, rank, x_bytes, w_bytes, bias_bytes, out_bytes, has_bias):
    u = (2 * tm * rank * x_bytes      # x tile       (double-buffered)
         + 2 * rank * tn * w_bytes    # cola_b tile  (<= 2 buffers)
         + 2 * tm * tn * out_bytes    # output tile  (double-buffered)
         + tm * tn * 4)               # f32 accumulator inside the kernel
    if has_bias:
        u += 2 * tn * bias_bytes
    return u


def _shrink_to_budget(tm, tn, rank, x_bytes, w_bytes, bias_bytes, out_bytes,
                      sublane, budget, has_bias):
    """Shrink (tm, tn) until the VMEM usage estimate fits the budget.

    Preference order: keep tn == full N as long as possible (contiguous row
    writeback), shrink tm first, then tn, then tm again.
    """
    def use(a, b):
        return _usage(a, b, rank, x_bytes, w_bytes, bias_bytes, out_bytes,
                      has_bias)

    while use(tm, tn) > budget:
        if tm > 512:
            tm = max(512, (tm // 2 // sublane) * sublane)
        elif tn > 128:
            tn = max(128, _round_up(tn // 2, 128))
        elif tm > sublane:
            tm = max(sublane, (tm // 2 // sublane) * sublane)
        else:
            break
    return tm, tn


# ------------------------------- wrapper ----------------------------------


def cola_mup_proj(x, cola_b, bias=None, *, compute_dtype=None, out_dtype=None,
                  tm=None, tn=None):
    """out = x @ cola_b (+ bias), computed in a Pallas TPU kernel.

    compute_dtype: optional dtype for the matmul inputs (e.g. jnp.bfloat16);
        the cast happens inside the kernel, accumulation is always f32.
        None -> keep x.dtype (exact module math).
    out_dtype: output dtype.  None -> x.dtype (exact module semantics).
        Passing jnp.bfloat16 halves the dominant HBM stream (output write)
        and is the recommended fast path when the caller tolerates bf16.
    """
    *lead, rank = x.shape
    r2, N = cola_b.shape
    assert rank == r2, "last dim of x must equal cola_b rank"

    out_dtype = jnp.dtype(out_dtype) if out_dtype is not None else jnp.dtype(x.dtype)
    compute_dtype = (jnp.dtype(compute_dtype) if compute_dtype is not None
                     else jnp.dtype(x.dtype))

    M = 1
    for d in lead:
        M *= d
    if M == 0:  # empty leading dims: no kernel launch
        return jnp.zeros((*lead, N), out_dtype)

    x2d = x.reshape(M, rank)
    bias2d = None if bias is None else bias.reshape(1, N)
    has_bias = bias is not None

    x_bytes = x.dtype.itemsize
    w_bytes = cola_b.dtype.itemsize
    bias_bytes = 0 if bias is None else bias.dtype.itemsize
    out_bytes = out_dtype.itemsize
    sublane = 8 if (x_bytes >= 4 and out_bytes >= 4) else 16

    budget, vmem_limit = _vmem_budget()

    # --- auto tile selection: prefer full-N (effective 1-D grid over M) ---
    tm_cap = 2048 if out_bytes <= 2 else 1024
    tm_sel = M if M <= tm_cap else tm_cap      # full dim or multiple of sublane
    tn_sel = N                                 # full dim: always a legal block
    tm_sel, tn_sel = _shrink_to_budget(tm_sel, tn_sel, rank, x_bytes, w_bytes,
                                       bias_bytes, out_bytes, sublane, budget,
                                       has_bias)

    # --- manual overrides (re-checked against the VMEM budget) ---
    if tm is not None:
        tm_i = int(tm)
        tm_sel = M if (tm_i >= M or M <= sublane) else max(
            sublane, (tm_i // sublane) * sublane)
    if tn is not None:
        tn_i = int(tn)
        tn_sel = N if (tn_i >= N or N <= 128) else max(
            128, (tn_i // 128) * 128)
    if tm is not None or tn is not None:
        tm_sel, tn_sel = _shrink_to_budget(tm_sel, tn_sel, rank, x_bytes,
                                           w_bytes, bias_bytes, out_bytes,
                                           sublane, budget, has_bias)

    grid_m = _cdiv(M, tm_sel)
    grid_n = _cdiv(N, tn_sel)
    # N (weights) outermost, M (activations) innermost: cola_b / bias tiles
    # are fetched once per column tile (once total when grid_n == 1).
    grid = (grid_n, grid_m)

    cost = pl.CostEstimate(
        flops=2 * M * N * rank,
        transcendentals=0,
        bytes_accessed=(M * rank * x_bytes
                        + rank * N * w_bytes
                        + (N * bias_bytes if has_bias else 0)
                        + M * N * out_bytes),
    )

    x_spec = pl.BlockSpec((tm_sel, rank), lambda j, i: (i, 0))
    w_spec = pl.BlockSpec((rank, tn_sel), lambda j, i: (0, j))
    out_spec = pl.BlockSpec((tm_sel, tn_sel), lambda j, i: (i, j))

    if has_bias:
        kernel = functools.partial(_cola_kernel_bias, compute_dtype=compute_dtype)
        bias_spec = pl.BlockSpec((1, tn_sel), lambda j, i: (0, j))
        in_specs = [x_spec, w_spec, bias_spec]
        args = (x2d, cola_b, bias2d)
    else:
        kernel = functools.partial(_cola_kernel_nobias, compute_dtype=compute_dtype)
        in_specs = [x_spec, w_spec]
        args = (x2d, cola_b)

    out2d = pl.pallas_call(
        kernel,
        out_shape=jax.ShapeDtypeStruct((M, N), out_dtype),
        grid_spec=pltpu.PrefetchScalarGridSpec(
            num_scalar_prefetch=0,
            grid=grid,
            in_specs=in_specs,
            out_specs=out_spec,
        ),
        compiler_params=pltpu.CompilerParams(
            dimension_semantics=("parallel", "parallel"),
            vmem_limit_bytes=int(vmem_limit),
        ),
        cost_estimate=cost,
    )(*args)

    return out2d.reshape(*lead, N)


# ------------------------------ init helper -------------------------------


def init_cola_mup_params(key, in_features, out_features, rank, bias=True,
                         dtype=jnp.float32):
    """Deterministic synthetic init mirroring ColaMUpProjLayer.__init__."""
    k_b, k_bias = jax.random.split(key)
    target_sdv = (in_features + out_features) ** (-0.5)
    cola_b = (jax.random.normal(k_b, (rank, out_features), dtype)
              / rank ** 0.25 * target_sdv ** 0.5)
    if bias:
        stdv = 1.0 / out_features ** 0.5
        b = jax.random.uniform(k_bias, (out_features,), dtype,
                               minval=-stdv, maxval=stdv)
    else:
        b = None
    return cola_b, b


if __name__ == "__main__":
    # Small shapes consistent with the module's forward:
    #   x: (batch=2, seq=8, rank=32), in_features=64, out_features=128
    in_features, out_features, rank = 64, 128, 32
    batch, seq = 2, 8

    key = jax.random.PRNGKey(0)
    k_x, k_p = jax.random.split(key)

    x = jax.random.normal(k_x, (batch, seq, rank), jnp.float32)
    cola_b, bias = init_cola_mup_params(k_p, in_features, out_features, rank,
                                        bias=True)

    ref = jnp.matmul(x, cola_b) + bias

    # 1) f32 path (exact module semantics).
    out = jax.block_until_ready(cola_mup_proj(x, cola_b, bias))
    assert out.shape == (batch, seq, out_features)
    assert jnp.allclose(out, ref, atol=1e-5, rtol=1e-5)

    # 2) bf16 compute / bf16 output fast path (halves the dominant HBM stream).
    out_bf16 = jax.block_until_ready(
        cola_mup_proj(x, cola_b, bias,
                      compute_dtype=jnp.bfloat16, out_dtype=jnp.bfloat16))
    assert out_bf16.dtype == jnp.bfloat16
    assert jnp.allclose(out_bf16.astype(jnp.float32), ref,
                        atol=5e-2, rtol=5e-2)

    # 3) bias=None path (module allows bias=False) -- kernel variant without
    #    a bias ref, no zero-bias array is materialized.
    out_nb = jax.block_until_ready(cola_mup_proj(x, cola_b, None))
    assert jnp.allclose(out_nb, jnp.matmul(x, cola_b), atol=1e-5, rtol=1e-5)

    # 4) empty leading dims (M == 0) -- no kernel launch, shape-only result.
    out_empty = cola_mup_proj(jnp.zeros((0, seq, rank), jnp.float32),
                              cola_b, bias)
    assert out_empty.shape == (0, seq, out_features)

    print("KERNEL_OK")
</pallas_src>

<mosaic_0001>
module attributes {stable_mosaic.version = 11 : i64} {
  func.func @_cola_kernel_bias(%arg0: i32, %arg1: i32, %arg2: memref<16x32xf32, #tpu.memory_space<vmem>>, %arg3: memref<32x128xf32, #tpu.memory_space<vmem>>, %arg4: memref<1x128xf32, #tpu.memory_space<vmem>>, %arg5: memref<16x128xf32, #tpu.memory_space<vmem>>) attributes {dimension_semantics = [#tpu.dimension_semantics<parallel>, #tpu.dimension_semantics<parallel>], iteration_bounds = array<i64: 1, 1>, scalar_prefetch = 0 : i64, scratch_operands = 0 : i64, tpu.core_type = #tpu.core_type<tc>, window_params = [{transform_indices = @transform_0, window_bounds = array<i64: 16, 32>}, {transform_indices = @transform_1, window_bounds = array<i64: 32, 128>}, {transform_indices = @transform_2, window_bounds = array<i64: 1, 128>}, {transform_indices = @transform_3, window_bounds = array<i64: 16, 128>}]} {
    %c0 = arith.constant 0 : index
    %c0_0 = arith.constant 0 : index
    %0 = vector.load %arg2[%c0, %c0_0] : memref<16x32xf32, #tpu.memory_space<vmem>>, vector<16x32xf32>
    %c0_1 = arith.constant 0 : index
    %c0_2 = arith.constant 0 : index
    %1 = vector.load %arg3[%c0_1, %c0_2] : memref<32x128xf32, #tpu.memory_space<vmem>>, vector<32x128xf32>
    %cst = arith.constant dense<0.000000e+00> : vector<16x128xf32>
    %2 = tpu.matmul %0, %1, %cst {dimension_numbers = #tpu.dot_dimension_numbers<[1], [0], [0], [1], [0, 0, 1, 1], [], []>} : vector<16x32xf32>, vector<32x128xf32>, vector<16x128xf32> -> vector<16x128xf32>
    %c0_3 = arith.constant 0 : index
    %c0_4 = arith.constant 0 : index
    %3 = vector.load %arg4[%c0_3, %c0_4] : memref<1x128xf32, #tpu.memory_space<vmem>>, vector<1x128xf32>
    %4 = vector.broadcast %3 : vector<1x128xf32> to vector<16x128xf32>
    %5 = arith.addf %2, %4 : vector<16x128xf32>
    %c0_5 = arith.constant 0 : index
    %c0_6 = arith.constant 0 : index
    %6 = vector.load %arg5[%c0_5, %c0_6] : memref<16x128xf32, #tpu.memory_space<vmem>>, vector<16x128xf32>
    tpu.vector_store %arg5[%c0_5, %c0_6], %5 {strides = array<i32>} : memref<16x128xf32, #tpu.memory_space<vmem>>, vector<16x128xf32>,
    return
  }
  func.func @transform_0(%arg0: i32, %arg1: i32) -> (i32, i32) {
    %c0_i32 = arith.constant 0 : i32
    %c0_i32_0 = arith.constant 0 : i32
    return %arg1, %c0_i32 : i32, i32
  }
  func.func @transform_1(%arg0: i32, %arg1: i32) -> (i32, i32) {
    %c0_i32 = arith.constant 0 : i32
    %c0_i32_0 = arith.constant 0 : i32
    return %c0_i32, %arg0 : i32, i32
  }
  func.func @transform_2(%arg0: i32, %arg1: i32) -> (i32, i32) {
    %c0_i32 = arith.constant 0 : i32
    %c0_i32_0 = arith.constant 0 : i32
    return %c0_i32, %arg0 : i32, i32
  }
  func.func @transform_3(%arg0: i32, %arg1: i32) -> (i32, i32) {
    %c0_i32 = arith.constant 0 : i32
    return %arg1, %arg0 : i32, i32
  }
}

</mosaic_0001>

<bundles_post_ra>
// kernel: tpu_custom_call.1
= control target key start
LH: loop header
LB: loop body
LE: loop exit
PB: predicated region body
PF: predicated region fallthrough
CT: control target
= control target key end

     0   :  { %8 = vsyncpa [#allocation3], 0  ;;  %s336_s0 = inlined_call_operand.hbm [shape: f32[16,32], index: 0, kind: input, shape index: {}]   ;;  %s337_s1 = inlined_call_operand.hbm [shape: f32[32,128], index: 1, kind: input, shape index: {}]   ;;  %s338_s2 = inlined_call_operand.vmem [shape: f32[1,128], index: 2, kind: input, shape index: {}]   ;;  %s339_s3 = inlined_call_operand.hbm [shape: f32[16,128], index: 3, kind: output, shape index: {}]  }
   0x1   :  { %9 = vsyncpa [#allocation6], 0 }
   0x2   :  { %10 = vsyncpa [#allocation4], 0  ;;  %s263_s12 = smov [#allocation2]   ;;  %s191_s16 = scalar_lea.hbm %s336_s0, 256 }
   0x3   :  { %s16_s13 = sshll.u32 %s263_s12, 4  ;;  %p192_p0 = scmp.ne.s32.totalorder %s336_s0, %s191_s16  ;;  %s17_s13 = int_to_ptr.vmem [resolvable:$true] %s16_s13 }
   0x4   :  { %p195_p1 = scmp.lt.u32.totalorder %s191_s16, %s336_s0 }
   0x6   :  { %p197_p2 = pnand %p195_p1, %p192_p0 }
   0x8   :  { %200 = shalt.err (!%p197_p2)
}
   0x9   :  { %s201_s21 = scalar_lea.vmem %s17_s13, 256  ;;  %p206_p4 = scmp.lt.s32.totalorder %s17_s13, %s17_s13 }
   0xa   :  { %p202_p3 = scmp.ne.s32.totalorder %s17_s13, %s201_s21  ;;  %p207_p5 = scmp.lt.s32.totalorder %s201_s21, %s201_s21 }
   0xc   :  { %p208_p6 = por %p207_p5, %p206_p4 }
   0xe   :  { %p209_p7 = pnand %p208_p6, %p202_p3 }
  0x10   :  { %212 = shalt.err (!%p209_p7)
}
  0x11   :  { %s264_s22 = smov 128   ;;  %s265_s23 = smov 8  }
  0x12   :  { %22 = dma.hbm_to_vmem [thread:$0]  %s336_s0, 256, %s17_s13, [#allocation3], %s264_s22, %s264_s22, %s265_s23  }
  0x13   :  { %s266_s26 = smov [#allocation5]   ;;  %s213_s30 = scalar_lea.hbm %s337_s1, 512 }
  0x14   :  { %s28_s27 = sshll.u32 %s266_s26, 4  ;;  %p214_p8 = scmp.ne.s32.totalorder %s337_s1, %s213_s30  ;;  %s29_s27 = int_to_ptr.vmem [resolvable:$true] %s28_s27 }
  0x15   :  { %p217_p9 = scmp.lt.u32.totalorder %s213_s30, %s337_s1 }
  0x17   :  { %p219_p10 = pnand %p217_p9, %p214_p8 }
  0x19   :  { %222 = shalt.err (!%p219_p10)
}
  0x1a   :  { %s223_s8 = scalar_lea.vmem %s29_s27, 512  ;;  %p228_p12 = scmp.lt.s32.totalorder %s29_s27, %s29_s27 }
  0x1b   :  { %p224_p11 = scmp.ne.s32.totalorder %s29_s27, %s223_s8  ;;  %p229_p13 = scmp.lt.s32.totalorder %s223_s8, %s223_s8 }
  0x1d   :  { %p230_p0 = por %p229_p13, %p228_p12 }
  0x1f   :  { %p231_p1 = pnand %p230_p0, %p224_p11 }
  0x21   :  { %234 = shalt.err (!%p231_p1)
}
  0x22   :  { %34 = dma.hbm_to_vmem [thread:$0]  %s337_s1, 512, %s29_s27, [#allocation6], %s264_s22, %s264_s22, %s265_s23  }
  0x23   :  { %257 = dma.done.wait [#allocation3], 256  }
  0x24   :  { %258 = vsyncadd [#allocation3], 4294967040 }
  0x25   :  { %259 = dma.done.wait [#allocation6], 512  }
  0x26   :  { %260 = vsyncadd [#allocation6], 4294966784  ;;  %vm56_vm0 = vcmask 261120   ;;  %v45_v0 = vld [vmem:[#allocation5] sm:$0xff]  ;;  %v46_v1 = vld [vmem:[#allocation5 + $0x8] sm:$0xff]  ;;  %s267_s11 = smov [#allocation7]  }
  0x27   :  { %v47_v2 = vld [vmem:[#allocation5 + $0x10] sm:$0xff]  ;;  %v178_v3 = vpack.c.bf16 %v46_v1, %v45_v0  ;;  %v48_v4 = vld [vmem:[#allocation5 + $0x18] sm:$0xff]  ;;  %s145_s12 = sshll.u32 %s267_s11, 4  ;;  %s146_s12 = int_to_ptr.vmem [resolvable:$true] %s145_s12 }
  0x28   :  { %v43_v5 = vld [vmem:[#allocation2] sm:$0xff]  ;;  %v182_v6 = vpack.c.bf16 %v48_v4, %v47_v2  ;;  %v44_v7 = vld [vmem:[#allocation2 + $0x8] sm:$0xff]  ;;  %s235_s13 = scalar_lea.vmem %s146_s12, 256  ;;  %p240_p3 = scmp.lt.s32.totalorder %s146_s12, %s146_s12 }
  0x29   :  { %175 = vmatprep.mubr.msk.f32.mxu0 %vm56_vm0, %v43_v5  ;;  %179 = vmatprep.subr.bf16.mxu0 %v178_v3  ;;  %v158_v8 = vld [vmem:[%s338_s2] ss:$0 sm:$0xff]  ;;  %p236_p2 = scmp.ne.s32.totalorder %s146_s12, %s235_s13  ;;  %p241_p4 = scmp.lt.s32.totalorder %s235_s13, %s235_s13 }
  0x2a   :  { %181 = vmatpush3.bf16.msra.mxu0 %v178_v3 }
  0x2b   :  { %183 = vmatprep.subr.bf16.mxu0 %v182_v6  ;;  %p242_p5 = por %p241_p4, %p240_p3 }
  0x2d   :  { %p243_p6 = pnand %p242_p5, %p236_p2 }
  0x2e   :  { %185 = vmatpush3.bf16.msra.mxu0 %v182_v6 }
  0x31   :  { %176 = vmatmul.mubr.msk.f32.vlgmr.msra.gmra.mrb[0].mxu0 %vm56_vm0, %v44_v7 }
 0x104   :  { %v177_v9 = vpop.f32.mrb[0].mxu0 }
 0x105   :  { %v135_v10 = vadd.f32 %v177_v9, %v158_v8  ;;  %v129_v11 = vpop.f32.mrb[1].mxu0 }
 0x106   :  { %v130_v12 = vadd.f32 %v158_v8, %v129_v11 }
 0x107   :  { %139 = vst [vmem:[#allocation7 + $0x8] sm:$0xff] %v135_v10 }
 0x108   :  { %138 = vst [vmem:[#allocation7] sm:$0xff] %v130_v12 }
 0x109   :  { %246 = shalt.err (!%p243_p6)
}
 0x10a   :  { %s247_s2 = scalar_lea.hbm %s339_s3, 256 }
 0x10b   :  { %p248_p7 = scmp.ne.s32.totalorder %s339_s3, %s247_s2  ;;  %p251_p8 = scmp.lt.u32.totalorder %s247_s2, %s339_s3 }
 0x10d   :  { %p253_p9 = pnand %p251_p8, %p248_p7 }
 0x10f   :  { %256 = shalt.err (!%p253_p9)
}
 0x110   :  { %151 = dma.vmem_to_hbm [thread:$0]  %s146_s12, 256, %s339_s3, [#allocation4], %s264_s22, %s264_s22, %s265_s23  }
 0x111   :  { %261 = dma.done.wait [#allocation4], 256  }
 0x112   :  { %262 = vsyncadd [#allocation4], 4294967040 }
 0x113   :  { %155 = vsyncpa [#allocation3], 1 }
 0x114   :  { %156 = vsyncpa [#allocation6], 1 }
 0x115   :  { %157 = vsyncpa [#allocation4], 1 }

</bundles_post_ra>
